<compile_context>
chip_gen: v7x
topology: tpu7x:2x2x1
jax: 0.10.0
libtpu: 0.0.40
codegen_flags: <defaults>
</compile_context>

<pallas_src>
import jax
import jax.numpy as jnp
from jax.experimental import pallas as pl
from jax.experimental.pallas import tpu as pltpu

NEG_SLOPE = 0.01  # PyTorch nn.LeakyReLU default negative_slope
_MIB = 1024 * 1024


def _leaky_relu(x):
    return jnp.where(x >= 0, x, NEG_SLOPE * x)


def _round_up(n, m):
    return ((n + m - 1) // m) * m


# --------------------------------------------------------------------------
# Kernel
# --------------------------------------------------------------------------
def encoder_kernel(x_ref, w1_ref, b1_ref, w2_ref, b2_ref, wh_ref, bh_ref, out_ref):
    x = x_ref[...]  # (TILE_B, input_dim)

    # fc layer 1: Linear(input_dim, hidden) + LeakyReLU  (MXU matmul, f32 acc)
    h = jnp.dot(x, w1_ref[...], preferred_element_type=jnp.float32) + b1_ref[...]
    h = _leaky_relu(h)

    # fc layer 2: Linear(hidden, hidden) + LeakyReLU
    h = h.astype(w2_ref.dtype)  # no-op in f32 mode; enables bf16 MXU inputs
    h = jnp.dot(h, w2_ref[...], preferred_element_type=jnp.float32) + b2_ref[...]
    h = _leaky_relu(h)

    # fused heads: [mean | log_var | zero-pad] in one matmul -> one lane-dense
    # (TILE_B, out_width) store (out_width is a multiple of 128).
    h = h.astype(wh_ref.dtype)
    out = jnp.dot(h, wh_ref[...], preferred_element_type=jnp.float32) + bh_ref[...]
    out_ref[...] = out.astype(out_ref.dtype)


# --------------------------------------------------------------------------
# Generation-aware sizing helpers
# --------------------------------------------------------------------------
def _tpu_generation_hints():
    """Return (per-TC VMEM capacity bytes, TensorCore-count heuristic).

    v5e/v6e: 128 MiB VMEM, 1 TC per chip.  v7x-class: 64 MiB VMEM, 2 TCs.
    """
    vmem_bytes = 128 * _MIB
    try:
        vmem_bytes = int(pltpu.get_tpu_info().vmem_capacity_bytes)
    except Exception:  # interpret mode / info unavailable -> conservative default
        pass
    num_cores = 2 if vmem_bytes <= 96 * _MIB else 1
    return vmem_bytes, num_cores


def _pick_tile_b(B, num_cores, max_tile_b):
    """Batch tile: multiple of 8 (sublane); >=2 grid steps per core when B permits."""
    b8 = _round_up(max(B, 1), 8)
    if num_cores > 1:
        tile = _round_up(pl.cdiv(B, 2 * num_cores), 8)
    else:
        tile = b8  # single TC: fewest grid steps (per-step overhead dominates)
    return int(max(8, min(tile, max_tile_b, b8)))


# --------------------------------------------------------------------------
# Parameter preparation (ONCE, outside the per-call hot path)
# --------------------------------------------------------------------------
def prepare_params(params, *, use_bf16=False):
    """Fuse mean/log_var heads and zero-pad to a lane-dense (128-multiple) width."""
    w1, b1, w2, b2, wm, bm, wv, bv = params
    latent_dim = wm.shape[1]
    out_width = _round_up(2 * latent_dim, 128)

    wh = jnp.concatenate([wm, wv], axis=1)   # (hidden, 2*latent)
    bh = jnp.concatenate([bm, bv], axis=1)   # (1, 2*latent)
    pad = out_width - 2 * latent_dim
    if pad:
        wh = jnp.pad(wh, ((0, 0), (0, pad)))  # zero columns -> sliced off later
        bh = jnp.pad(bh, ((0, 0), (0, pad)))

    w_dtype = jnp.bfloat16 if use_bf16 else jnp.float32
    w1, w2, wh = (w.astype(w_dtype) for w in (w1, w2, wh))
    b1, b2, bh = (b.astype(jnp.float32) for b in (b1, b2, bh))

    return dict(w1=w1, b1=b1, w2=w2, b2=b2, wh=wh, bh=bh,
                latent_dim=latent_dim, out_width=out_width, use_bf16=use_bf16)


# --------------------------------------------------------------------------
# Forward wrapper
# --------------------------------------------------------------------------
def encoder_forward(x, prepared, *, max_tile_b=None):
    """x: (B, ...) any trailing shape; flattened to (B, input_dim) like nn.Flatten."""
    B = x.shape[0]
    x2d = x.reshape(B, -1)
    input_dim = x2d.shape[1]

    w1, b1, w2, b2, wh, bh = (prepared[k] for k in ("w1", "b1", "w2", "b2", "wh", "bh"))
    hidden_dim = w1.shape[1]
    latent_dim = prepared["latent_dim"]
    out_width = prepared["out_width"]

    if prepared["use_bf16"]:
        x2d = x2d.astype(jnp.bfloat16)

    vmem_bytes, num_cores = _tpu_generation_hints()
    if max_tile_b is None:
        # v5e/v6e: single TC + 128 MiB VMEM -> big tiles; v7x: keep both TCs busy.
        max_tile_b = 1024 if num_cores == 1 else 256
    tile_b = _pick_tile_b(B, num_cores, max_tile_b)
    grid = (pl.cdiv(B, tile_b),)  # ragged last block: Pallas masks the output store

    # VMEM budget: double-buffered x/out tiles + resident weights + activation
    # temporaries, doubled for slack; generation-aware cap with Mosaic headroom.
    x_item = jnp.dtype(x2d.dtype).itemsize
    w_item = jnp.dtype(w1.dtype).itemsize
    est = (
        2 * tile_b * input_dim * x_item                       # x tile, double-buffered
        + 2 * tile_b * out_width * 4                          # out tile, double-buffered
        + 2 * (w1.size + w2.size + wh.size) * w_item          # weights (double-buffered)
        + 2 * (b1.size + b2.size + bh.size) * 4               # biases
        + 4 * tile_b * hidden_dim * 4                         # h temporaries
    )
    cap = max(min(vmem_bytes - 16 * _MIB, 100 * _MIB), 16 * _MIB)
    vmem_limit = int(min(max(2 * est, 32 * _MIB), cap))

    out = pl.pallas_call(
        encoder_kernel,
        out_shape=jax.ShapeDtypeStruct((B, out_width), jnp.float32),
        grid=grid,
        in_specs=[
            pl.BlockSpec((tile_b, input_dim), lambda i: (i, 0)),   # x: batch-blocked
            pl.BlockSpec(w1.shape, lambda i: (0, 0)),              # weights: resident
            pl.BlockSpec(b1.shape, lambda i: (0, 0)),
            pl.BlockSpec(w2.shape, lambda i: (0, 0)),
            pl.BlockSpec(b2.shape, lambda i: (0, 0)),
            pl.BlockSpec(wh.shape, lambda i: (0, 0)),
            pl.BlockSpec(bh.shape, lambda i: (0, 0)),
        ],
        out_specs=pl.BlockSpec((tile_b, out_width), lambda i: (i, 0)),
        compiler_params=pltpu.CompilerParams(
            dimension_semantics=("parallel",),
            vmem_limit_bytes=vmem_limit,
        ),
    )(x2d, w1, b1, w2, b2, wh, bh)

    mean = out[:, :latent_dim]
    log_var = out[:, latent_dim:2 * latent_dim]
    return mean, log_var


# --------------------------------------------------------------------------
# Synthetic params + pure-JAX reference
# --------------------------------------------------------------------------
def init_params(key, input_dim, hidden_dim, latent_dim):
    """Deterministic synthetic init (uniform, PyTorch-like kaiming-uniform scale)."""
    ks = jax.random.split(key, 8)

    def lin(kw, kb, fan_in, fan_out):
        bound = 1.0 / jnp.sqrt(fan_in)
        w = jax.random.uniform(kw, (fan_in, fan_out), jnp.float32, -bound, bound)
        b = jax.random.uniform(kb, (1, fan_out), jnp.float32, -bound, bound)
        return w, b

    w1, b1 = lin(ks[0], ks[1], input_dim, hidden_dim)
    w2, b2 = lin(ks[2], ks[3], hidden_dim, hidden_dim)
    wm, bm = lin(ks[4], ks[5], hidden_dim, latent_dim)
    wv, bv = lin(ks[6], ks[7], hidden_dim, latent_dim)
    return (w1, b1, w2, b2, wm, bm, wv, bv)


def reference_forward(x, params):
    """Pure-JAX reference for correctness check."""
    B = x.shape[0]
    x2d = x.reshape(B, -1)
    w1, b1, w2, b2, wm, bm, wv, bv = params
    h = _leaky_relu(x2d @ w1 + b1)
    h = _leaky_relu(h @ w2 + b2)
    return h @ wm + bm, h @ wv + bv


if __name__ == "__main__":
    key = jax.random.PRNGKey(0)
    k_x, k_p = jax.random.split(key)

    # Small shapes: batch=8, image (4, 8, 8) -> input_dim=256, hidden=128, latent=32.
    B, C, H, W = 8, 4, 8, 8
    input_dim, hidden_dim, latent_dim = C * H * W, 128, 32

    x = jax.random.normal(k_x, (B, C, H, W), jnp.float32)
    params = init_params(k_p, input_dim, hidden_dim, latent_dim)
    prepared = prepare_params(params)  # fused + lane-padded head, built once

    mean, log_var = encoder_forward(x, prepared)
    jax.block_until_ready((mean, log_var))

    ref_mean, ref_logvar = reference_forward(x, params)
    assert mean.shape == (B, latent_dim) and log_var.shape == (B, latent_dim)
    assert jnp.allclose(mean, ref_mean, atol=1e-5, rtol=1e-5)
    assert jnp.allclose(log_var, ref_logvar, atol=1e-5, rtol=1e-5)

    print("KERNEL_OK")
</pallas_src>

<mosaic_0001>
module attributes {stable_mosaic.version = 11 : i64} {
  func.func @encoder_kernel(%arg0: i32, %arg1: memref<8x256xf32, #tpu.memory_space<vmem>>, %arg2: memref<256x128xf32, #tpu.memory_space<vmem>>, %arg3: memref<1x128xf32, #tpu.memory_space<vmem>>, %arg4: memref<128x128xf32, #tpu.memory_space<vmem>>, %arg5: memref<1x128xf32, #tpu.memory_space<vmem>>, %arg6: memref<128x128xf32, #tpu.memory_space<vmem>>, %arg7: memref<1x128xf32, #tpu.memory_space<vmem>>, %arg8: memref<8x128xf32, #tpu.memory_space<vmem>>) attributes {dimension_semantics = [#tpu.dimension_semantics<parallel>], iteration_bounds = array<i64: 1>, scalar_prefetch = 0 : i64, scratch_operands = 0 : i64, tpu.core_type = #tpu.core_type<tc>, window_params = [{transform_indices = @transform_0, window_bounds = array<i64: 8, 256>}, {pipeline_mode = #tpu.pipeline_mode<synchronous>, transform_indices = @transform_1, window_bounds = array<i64: 256, 128>}, {pipeline_mode = #tpu.pipeline_mode<synchronous>, transform_indices = @transform_2, window_bounds = array<i64: 1, 128>}, {pipeline_mode = #tpu.pipeline_mode<synchronous>, transform_indices = @transform_3, window_bounds = array<i64: 128, 128>}, {pipeline_mode = #tpu.pipeline_mode<synchronous>, transform_indices = @transform_4, window_bounds = array<i64: 1, 128>}, {pipeline_mode = #tpu.pipeline_mode<synchronous>, transform_indices = @transform_5, window_bounds = array<i64: 128, 128>}, {pipeline_mode = #tpu.pipeline_mode<synchronous>, transform_indices = @transform_6, window_bounds = array<i64: 1, 128>}, {transform_indices = @transform_7, window_bounds = array<i64: 8, 128>}]} {
    %c0 = arith.constant 0 : index
    %c0_0 = arith.constant 0 : index
    %0 = vector.load %arg1[%c0, %c0_0] : memref<8x256xf32, #tpu.memory_space<vmem>>, vector<8x256xf32>
    %c0_1 = arith.constant 0 : index
    %c0_2 = arith.constant 0 : index
    %1 = vector.load %arg2[%c0_1, %c0_2] : memref<256x128xf32, #tpu.memory_space<vmem>>, vector<256x128xf32>
    %cst = arith.constant dense<0.000000e+00> : vector<8x128xf32>
    %2 = tpu.matmul %0, %1, %cst {dimension_numbers = #tpu.dot_dimension_numbers<[1], [0], [0], [1], [0, 0, 1, 1], [], []>} : vector<8x256xf32>, vector<256x128xf32>, vector<8x128xf32> -> vector<8x128xf32>
    %c0_3 = arith.constant 0 : index
    %c0_4 = arith.constant 0 : index
    %3 = vector.load %arg3[%c0_3, %c0_4] : memref<1x128xf32, #tpu.memory_space<vmem>>, vector<1x128xf32>
    %4 = vector.broadcast %3 : vector<1x128xf32> to vector<8x128xf32>
    %5 = arith.addf %2, %4 : vector<8x128xf32>
    %cst_5 = arith.constant 0.000000e+00 : f32
    %6 = vector.broadcast %cst_5 : f32 to vector<8x128xf32>
    %7 = arith.cmpf oge, %5, %6 : vector<8x128xf32>
    %cst_6 = arith.constant 0.00999999977 : f32
    %8 = vector.broadcast %cst_6 : f32 to vector<8x128xf32>
    %9 = arith.mulf %8, %5 : vector<8x128xf32>
    %10 = arith.select %7, %5, %9 : vector<8x128xi1>, vector<8x128xf32>
    %c0_7 = arith.constant 0 : index
    %c0_8 = arith.constant 0 : index
    %11 = vector.load %arg4[%c0_7, %c0_8] : memref<128x128xf32, #tpu.memory_space<vmem>>, vector<128x128xf32>
    %cst_9 = arith.constant dense<0.000000e+00> : vector<8x128xf32>
    %12 = tpu.matmul %10, %11, %cst_9 {dimension_numbers = #tpu.dot_dimension_numbers<[1], [0], [0], [1], [0, 0, 1, 1], [], []>} : vector<8x128xf32>, vector<128x128xf32>, vector<8x128xf32> -> vector<8x128xf32>
    %c0_10 = arith.constant 0 : index
    %c0_11 = arith.constant 0 : index
    %13 = vector.load %arg5[%c0_10, %c0_11] : memref<1x128xf32, #tpu.memory_space<vmem>>, vector<1x128xf32>
    %14 = vector.broadcast %13 : vector<1x128xf32> to vector<8x128xf32>
    %15 = arith.addf %12, %14 : vector<8x128xf32>
    %cst_12 = arith.constant 0.000000e+00 : f32
    %16 = vector.broadcast %cst_12 : f32 to vector<8x128xf32>
    %17 = arith.cmpf oge, %15, %16 : vector<8x128xf32>
    %cst_13 = arith.constant 0.00999999977 : f32
    %18 = vector.broadcast %cst_13 : f32 to vector<8x128xf32>
    %19 = arith.mulf %18, %15 : vector<8x128xf32>
    %20 = arith.select %17, %15, %19 : vector<8x128xi1>, vector<8x128xf32>
    %c0_14 = arith.constant 0 : index
    %c0_15 = arith.constant 0 : index
    %21 = vector.load %arg6[%c0_14, %c0_15] : memref<128x128xf32, #tpu.memory_space<vmem>>, vector<128x128xf32>
    %cst_16 = arith.constant dense<0.000000e+00> : vector<8x128xf32>
    %22 = tpu.matmul %20, %21, %cst_16 {dimension_numbers = #tpu.dot_dimension_numbers<[1], [0], [0], [1], [0, 0, 1, 1], [], []>} : vector<8x128xf32>, vector<128x128xf32>, vector<8x128xf32> -> vector<8x128xf32>
    %c0_17 = arith.constant 0 : index
    %c0_18 = arith.constant 0 : index
    %23 = vector.load %arg7[%c0_17, %c0_18] : memref<1x128xf32, #tpu.memory_space<vmem>>, vector<1x128xf32>
    %24 = vector.broadcast %23 : vector<1x128xf32> to vector<8x128xf32>
    %25 = arith.addf %22, %24 : vector<8x128xf32>
    %c0_19 = arith.constant 0 : index
    %c0_20 = arith.constant 0 : index
    %26 = vector.load %arg8[%c0_19, %c0_20] : memref<8x128xf32, #tpu.memory_space<vmem>>, vector<8x128xf32>
    tpu.vector_store %arg8[%c0_19, %c0_20], %25 {strides = array<i32>} : memref<8x128xf32, #tpu.memory_space<vmem>>, vector<8x128xf32>,
    return
  }
  func.func @transform_0(%arg0: i32) -> (i32, i32) {
    %c0_i32 = arith.constant 0 : i32
    %c0_i32_0 = arith.constant 0 : i32
    return %arg0, %c0_i32 : i32, i32
  }
  func.func @transform_1(%arg0: i32) -> (i32, i32) {
    %c0_i32 = arith.constant 0 : i32
    %c0_i32_0 = arith.constant 0 : i32
    %c0_i32_1 = arith.constant 0 : i32
    return %c0_i32, %c0_i32_0 : i32, i32
  }
  func.func @transform_2(%arg0: i32) -> (i32, i32) {
    %c0_i32 = arith.constant 0 : i32
    %c0_i32_0 = arith.constant 0 : i32
    %c0_i32_1 = arith.constant 0 : i32
    return %c0_i32, %c0_i32_0 : i32, i32
  }
  func.func @transform_3(%arg0: i32) -> (i32, i32) {
    %c0_i32 = arith.constant 0 : i32
    %c0_i32_0 = arith.constant 0 : i32
    %c0_i32_1 = arith.constant 0 : i32
    return %c0_i32, %c0_i32_0 : i32, i32
  }
  func.func @transform_4(%arg0: i32) -> (i32, i32) {
    %c0_i32 = arith.constant 0 : i32
    %c0_i32_0 = arith.constant 0 : i32
    %c0_i32_1 = arith.constant 0 : i32
    return %c0_i32, %c0_i32_0 : i32, i32
  }
  func.func @transform_5(%arg0: i32) -> (i32, i32) {
    %c0_i32 = arith.constant 0 : i32
    %c0_i32_0 = arith.constant 0 : i32
    %c0_i32_1 = arith.constant 0 : i32
    return %c0_i32, %c0_i32_0 : i32, i32
  }
  func.func @transform_6(%arg0: i32) -> (i32, i32) {
    %c0_i32 = arith.constant 0 : i32
    %c0_i32_0 = arith.constant 0 : i32
    %c0_i32_1 = arith.constant 0 : i32
    return %c0_i32, %c0_i32_0 : i32, i32
  }
  func.func @transform_7(%arg0: i32) -> (i32, i32) {
    %c0_i32 = arith.constant 0 : i32
    %c0_i32_0 = arith.constant 0 : i32
    return %arg0, %c0_i32 : i32, i32
  }
}

</mosaic_0001>

<bundles_post_ra>
// kernel: tpu_custom_call.1
= control target key start
LH: loop header
LB: loop body
LE: loop exit
PB: predicated region body
PF: predicated region fallthrough
CT: control target
= control target key end

     0   :  { %12 = vsyncpa [#allocation3], 0  ;;  %s895_s0 = inlined_call_operand.hbm [shape: f32[8,256], index: 0, kind: input, shape index: {}]   ;;  %s896_s1 = inlined_call_operand.hbm [shape: f32[256,128], index: 1, kind: input, shape index: {}]   ;;  %s897_s2 = inlined_call_operand.vmem [shape: f32[1,128], index: 2, kind: input, shape index: {}]   ;;  %s898_s3 = inlined_call_operand.hbm [shape: f32[128,128], index: 3, kind: input, shape index: {}]   ;;  %s899_s4 = inlined_call_operand.vmem [shape: f32[1,128], index: 4, kind: input, shape index: {}]   ;;  %s900_s5 = inlined_call_operand.hbm [shape: f32[128,128], index: 5, kind: input, shape index: {}]   ;;  %s901_s6 = inlined_call_operand.vmem [shape: f32[1,128], index: 6, kind: input, shape index: {}]   ;;  %s902_s7 = inlined_call_operand.hbm [shape: f32[8,128], index: 7, kind: output, shape index: {}]  }
   0x1   :  { %13 = vsyncpa [#allocation6], 0 }
   0x2   :  { %14 = vsyncpa [#allocation9], 0 }
   0x3   :  { %15 = vsyncpa [#allocation4], 0  ;;  %s751_s24 = smov [#allocation5]   ;;  %s633_s28 = scalar_lea.hbm %s896_s1, 4096 }
   0x4   :  { %s31_s25 = sshll.u32 %s751_s24, 4  ;;  %p634_p0 = scmp.ne.s32.totalorder %s896_s1, %s633_s28  ;;  %s32_s25 = int_to_ptr.vmem [resolvable:$true] %s31_s25 }
   0x5   :  { %p637_p1 = scmp.lt.u32.totalorder %s633_s28, %s896_s1 }
   0x7   :  { %p639_p2 = pnand %p637_p1, %p634_p0 }
   0x9   :  { %642 = shalt.err (!%p639_p2)
}
   0xa   :  { %s643_s10 = scalar_lea.vmem %s32_s25, 4096  ;;  %p648_p4 = scmp.lt.s32.totalorder %s32_s25, %s32_s25 }
   0xb   :  { %p644_p3 = scmp.ne.s32.totalorder %s32_s25, %s643_s10  ;;  %p649_p5 = scmp.lt.s32.totalorder %s643_s10, %s643_s10 }
   0xd   :  { %p650_p6 = por %p649_p5, %p648_p4 }
   0xf   :  { %p651_p7 = pnand %p650_p6, %p644_p3 }
  0x11   :  { %654 = shalt.err (!%p651_p7)
}
  0x12   :  { %s752_s11 = smov 128   ;;  %s753_s12 = smov 8  }
  0x13   :  { %37 = dma.hbm_to_vmem [thread:$0]  %s896_s1, 4096, %s32_s25, [#allocation6], %s752_s11, %s752_s11, %s753_s12  }
  0x14   :  { %s754_s15 = smov [#allocation2]   ;;  %s755_s17 = smov [#allocation7]  }
  0x15   :  { %s22_s16 = sshll.u32 %s754_s15, 4  ;;  %s45_s18 = sshll.u32 %s755_s17, 4  ;;  %s23_s16 = int_to_ptr.vmem [resolvable:$true] %s22_s16  ;;  %s46_s18 = int_to_ptr.vmem [resolvable:$true] %s45_s18 }
  0x16   :  { %s655_s21 = scalar_lea.hbm %s895_s0, 256 }
  0x17   :  { %p656_p8 = scmp.ne.s32.totalorder %s895_s0, %s655_s21  ;;  %p659_p9 = scmp.lt.u32.totalorder %s655_s21, %s895_s0 }
  0x19   :  { %p661_p10 = pnand %p659_p9, %p656_p8 }
  0x1b   :  { %664 = shalt.err (!%p661_p10)
}
  0x1c   :  { %s665_s1 = scalar_lea.vmem %s23_s16, 256  ;;  %p670_p12 = scmp.lt.s32.totalorder %s23_s16, %s23_s16 }
  0x1d   :  { %p666_p11 = scmp.ne.s32.totalorder %s23_s16, %s665_s1  ;;  %p671_p13 = scmp.lt.s32.totalorder %s665_s1, %s665_s1 }
  0x1f   :  { %p672_p0 = por %p671_p13, %p670_p12 }
  0x21   :  { %p673_p1 = pnand %p672_p0, %p666_p11 }
  0x23   :  { %676 = shalt.err (!%p673_p1)
}
  0x24   :  { %25 = dma.hbm_to_vmem [thread:$0]  %s895_s0, 256, %s23_s16, [#allocation3]  }
  0x25   :  { %s677_s30 = scalar_lea.hbm %s898_s3, 2048 }
  0x26   :  { %p678_p2 = scmp.ne.s32.totalorder %s898_s3, %s677_s30  ;;  %p681_p3 = scmp.lt.u32.totalorder %s677_s30, %s898_s3 }
  0x28   :  { %p683_p4 = pnand %p681_p3, %p678_p2 }
  0x2a   :  { %686 = shalt.err (!%p683_p4)
}
  0x2b   :  { %s687_s14 = scalar_lea.vmem %s46_s18, 2048  ;;  %p692_p6 = scmp.lt.s32.totalorder %s46_s18, %s46_s18 }
  0x2c   :  { %p688_p5 = scmp.ne.s32.totalorder %s46_s18, %s687_s14  ;;  %p693_p7 = scmp.lt.s32.totalorder %s687_s14, %s687_s14 }
  0x2e   :  { %p694_p8 = por %p693_p7, %p692_p6 }
  0x30   :  { %p695_p9 = pnand %p694_p8, %p688_p5 }
  0x32   :  { %698 = shalt.err (!%p695_p9)
}
  0x33   :  { %51 = dma.hbm_to_vmem [thread:$0]  %s898_s3, 2048, %s46_s18, [#allocation6], %s752_s11, %s752_s11, %s753_s12  }
  0x34   :  { %s756_s16 = smov [#allocation8]   ;;  %s699_s21 = scalar_lea.hbm %s900_s5, 2048 }
  0x35   :  { %s59_s17 = sshll.u32 %s756_s16, 4  ;;  %p700_p10 = scmp.ne.s32.totalorder %s900_s5, %s699_s21  ;;  %s60_s17 = int_to_ptr.vmem [resolvable:$true] %s59_s17 }
  0x36   :  { %p703_p11 = scmp.lt.u32.totalorder %s699_s21, %s900_s5 }
  0x38   :  { %p705_p12 = pnand %p703_p11, %p700_p10 }
  0x3a   :  { %708 = shalt.err (!%p705_p12)
}
  0x3b   :  { %s709_s1 = scalar_lea.vmem %s60_s17, 2048  ;;  %p714_p0 = scmp.lt.s32.totalorder %s60_s17, %s60_s17 }
  0x3c   :  { %p710_p13 = scmp.ne.s32.totalorder %s60_s17, %s709_s1  ;;  %p715_p1 = scmp.lt.s32.totalorder %s709_s1, %s709_s1 }
  0x3e   :  { %p716_p2 = por %p715_p1, %p714_p0 }
  0x40   :  { %p717_p3 = pnand %p716_p2, %p710_p13 }
  0x42   :  { %720 = shalt.err (!%p717_p3)
}
  0x43   :  { %65 = dma.hbm_to_vmem [thread:$0]  %s900_s5, 2048, %s60_s17, [#allocation9], %s752_s11, %s752_s11, %s753_s12  }
  0x44   :  { %743 = dma.done.wait [#allocation3], 256  }
  0x45   :  { %744 = vsyncadd [#allocation3], 4294967040 }
  0x46   :  { %745 = dma.done.wait [#allocation6], 6144  }
  0x47   :  { %746 = vsyncadd [#allocation6], 4294961152 }
  0x48   :  { %747 = dma.done.wait [#allocation9], 2048  }
  0x49   :  { %748 = vsyncadd [#allocation9], 4294965248  ;;  %v757_v0 = vmov 0.0|0.0   ;;  %v98_v1 = vld [vmem:[#allocation5 + $0x80] sm:$0xff]  ;;  %v99_v2 = vld [vmem:[#allocation5 + $0x88] sm:$0xff]  ;;  %vm758_vm0 = vmmov 0  }
  0x4a   :  { %575 = vmatprep.subr.bf16.mxu1 %v757_v0  ;;  %v82_v3 = vld [vmem:[#allocation5] sm:$0xff]  ;;  %v543_v4 = vpack.c.bf16 %v99_v2, %v98_v1  ;;  %v83_v5 = vld [vmem:[#allocation5 + $0x8] sm:$0xff]  ;;  %v100_v6 = vld [vmem:[#allocation5 + $0x90] sm:$0xff]  ;;  %s760_s28 = smov [#allocation10]  }
  0x4b   :  { %v101_v7 = vld [vmem:[#allocation5 + $0x98] sm:$0xff]  ;;  %v545_v8 = vpack.c.bf16 %v83_v5, %v82_v3  ;;  %v84_v10 = vld [vmem:[#allocation5 + $0x10] sm:$0xff]  ;;  %v102_v12 = vld [vmem:[#allocation5 + $0xa0] sm:$0xff]  ;;  %s390_s29 = sshll.u32 %s760_s28, 4  ;;  %s391_s29 = int_to_ptr.vmem [resolvable:$true] %s390_s29 }
  0x4c   :  { %v547_v9 = vpack.c.bf16 %v101_v7, %v100_v6  ;;  %v85_v11 = vld [vmem:[#allocation5 + $0x18] sm:$0xff]  ;;  %544 = vmatprep.subr.bf16.mxu0 %v543_v4  ;;  %v103_v13 = vld [vmem:[#allocation5 + $0xa8] sm:$0xff]  ;;  %v86_v16 = vld [vmem:[#allocation5 + $0x20] sm:$0xff]  ;;  %s721_s30 = scalar_lea.vmem %s391_s29, 128  ;;  %p726_p5 = scmp.lt.s32.totalorder %s391_s29, %s391_s29 }
  0x4d   :  { %546 = vmatpush3.bf16.msra.mxu0 %v545_v8  ;;  %v549_v14 = vpack.c.bf16 %v85_v11, %v84_v10  ;;  %v551_v15 = vpack.c.bf16 %v103_v13, %v102_v12  ;;  %v87_v17 = vld [vmem:[#allocation5 + $0x28] sm:$0xff]  ;;  %v104_v18 = vld [vmem:[#allocation5 + $0xb0] sm:$0xff]  ;;  %v105_v19 = vld [vmem:[#allocation5 + $0xb8] sm:$0xff]  ;;  %v759_v12 = vmov 0.0   ;;  %p722_p4 = scmp.ne.s32.totalorder %s391_s29, %s721_s30  ;;  %p727_p6 = scmp.lt.s32.totalorder %s721_s30, %s721_s30 }
  0x4e   :  { %548 = vmatprep.subr.bf16.mxu0 %v547_v9  ;;  %v553_v20 = vpack.c.bf16 %v87_v17, %v86_v16  ;;  %v555_v21 = vpack.c.bf16 %v105_v19, %v104_v18  ;;  %v88_v22 = vld [vmem:[#allocation5 + $0x30] sm:$0xff]  ;;  %v89_v23 = vld [vmem:[#allocation5 + $0x38] sm:$0xff]  ;;  %v106_v24 = vld [vmem:[#allocation5 + $0xc0] sm:$0xff]  ;;  %505 = vmatprep.mubr.msk.f32.mxu1 %vm758_vm0, %v759_v12 }
  0x4f   :  { %v107_v25 = vld [vmem:[#allocation5 + $0xc8] sm:$0xff]  ;;  %v81_v26 = vld [vmem:[#allocation2 + $0x8] sm:$0xff]  ;;  %v194_v27 = vld [vmem:[#allocation7] sm:$0xff]  ;;  %v557_v29 = vpack.c.bf16 %v89_v23, %v88_v22  ;;  %p728_p7 = por %p727_p6, %p726_p5 }
  0x50   :  { %185 = vmatprep.mubr.f32.mxu0 %v81_v26  ;;  %v195_v28 = vld [vmem:[#allocation7 + $0x8] sm:$0xff]  ;;  %v196_v31 = vld [vmem:[#allocation7 + $0x10] sm:$0xff]  ;;  %v197_v32 = vld [vmem:[#allocation7 + $0x18] sm:$0xff]  ;;  %v559_v33 = vpack.c.bf16 %v107_v25, %v106_v24 }
  0x51   :  { %550 = vmatpush3.bf16.msra.mxu0 %v549_v14  ;;  %v576_v30 = vpack.c.bf16 %v195_v28, %v194_v27  ;;  %v90_v34 = vld [vmem:[#allocation5 + $0x40] sm:$0xff]  ;;  %v91_v35 = vld [vmem:[#allocation5 + $0x48] sm:$0xff]  ;;  %v108_v36 = vld [vmem:[#allocation5 + $0xd0] sm:$0xff]  ;;  %v579_v38 = vpack.c.bf16 %v197_v32, %v196_v31  ;;  %p729_p8 = pnand %p728_p7, %p722_p4 }
  0x52   :  { %552 = vmatprep.subr.bf16.mxu0 %v551_v15  ;;  %v109_v37 = vld [vmem:[#allocation5 + $0xd8] sm:$0xff]  ;;  %v198_v39 = vld [vmem:[#allocation7 + $0x20] sm:$0xff]  ;;  %v199_v40 = vld [vmem:[#allocation7 + $0x28] sm:$0xff]  ;;  %v561_v41 = vpack.c.bf16 %v91_v35, %v90_v34 }
  0x53   :  { %577 = vmatpush3.bf16.msra.mxu1 %v576_v30  ;;  %v563_v42 = vpack.c.bf16 %v109_v37, %v108_v36  ;;  %v92_v43 = vld [vmem:[#allocation5 + $0x50] sm:$0xff]  ;;  %v93_v44 = vld [vmem:[#allocation5 + $0x58] sm:$0xff]  ;;  %v110_v45 = vld [vmem:[#allocation5 + $0xe0] sm:$0xff]  ;;  %v582_v47 = vpack.c.bf16 %v199_v40, %v198_v39 }
  0x54   :  { %578 = vmatprep.subr.bf16.mxu1 %v757_v0  ;;  %v111_v46 = vld [vmem:[#allocation5 + $0xe8] sm:$0xff]  ;;  %v200_v48 = vld [vmem:[#allocation7 + $0x30] sm:$0xff]  ;;  %v201_v49 = vld [vmem:[#allocation7 + $0x38] sm:$0xff]  ;;  %v565_v50 = vpack.c.bf16 %v93_v44, %v92_v43 }
  0x55   :  { %554 = vmatpush3.bf16.msra.mxu0 %v553_v20  ;;  %v567_v51 = vpack.c.bf16 %v111_v46, %v110_v45  ;;  %v94_v52 = vld [vmem:[#allocation5 + $0x60] sm:$0xff]  ;;  %v95_v53 = vld [vmem:[#allocation5 + $0x68] sm:$0xff]  ;;  %v112_v54 = vld [vmem:[#allocation5 + $0xf0] sm:$0xff]  ;;  %v585_v56 = vpack.c.bf16 %v201_v49, %v200_v48 }
  0x56   :  { %556 = vmatprep.subr.bf16.mxu0 %v555_v21  ;;  %v113_v55 = vld [vmem:[#allocation5 + $0xf8] sm:$0xff]  ;;  %v202_v57 = vld [vmem:[#allocation7 + $0x40] sm:$0xff]  ;;  %v203_v58 = vld [vmem:[#allocation7 + $0x48] sm:$0xff]  ;;  %v569_v59 = vpack.c.bf16 %v95_v53, %v94_v52 }
  0x57   :  { %580 = vmatpush3.bf16.msra.mxu1 %v579_v38  ;;  %v571_v60 = vpack.c.bf16 %v113_v55, %v112_v54  ;;  %v96_v61 = vld [vmem:[#allocation5 + $0x70] sm:$0xff]  ;;  %v97_v62 = vld [vmem:[#allocation5 + $0x78] sm:$0xff]  ;;  %v588_v63 = vpack.c.bf16 %v203_v58, %v202_v57  ;;  %v206_v6 = vld [vmem:[#allocation7 + $0x60] sm:$0xff] }
  0x58   :  { %581 = vmatprep.subr.bf16.mxu1 %v757_v0  ;;  %v204_v1 = vld [vmem:[#allocation7 + $0x50] sm:$0xff]  ;;  %v205_v2 = vld [vmem:[#allocation7 + $0x58] sm:$0xff]  ;;  %v573_v3 = vpack.c.bf16 %v97_v62, %v96_v61  ;;  %v207_v7 = vld [vmem:[#allocation7 + $0x68] sm:$0xff] }
  0x59   :  { %558 = vmatpush3.bf16.msra.mxu0 %v557_v29  ;;  %v591_v4 = vpack.c.bf16 %v205_v2, %v204_v1  ;;  %v80_v5 = vld [vmem:[#allocation2] sm:$0xff]  ;;  %v594_v8 = vpack.c.bf16 %v207_v7, %v206_v6  ;;  %v209_v10 = vld [vmem:[#allocation7 + $0x78] sm:$0xff]  ;;  %v290_v13 = vld [vmem:[#allocation8] sm:$0xff] }
  0x5a   :  { %560 = vmatprep.subr.bf16.mxu0 %v559_v33  ;;  %v208_v9 = vld [vmem:[#allocation7 + $0x70] sm:$0xff]  ;;  %v291_v14 = vld [vmem:[#allocation8 + $0x8] sm:$0xff]  ;;  %v293_v17 = vld [vmem:[#allocation8 + $0x18] sm:$0xff] }
  0x5b   :  { %583 = vmatpush3.bf16.msra.mxu1 %v582_v47  ;;  %v597_v11 = vpack.c.bf16 %v209_v10, %v208_v9  ;;  %v292_v15 = vld [vmem:[#allocation8 + $0x10] sm:$0xff]  ;;  %v600_v16 = vpack.c.bf16 %v291_v14, %v290_v13  ;;  %v294_v19 = vld [vmem:[#allocation8 + $0x20] sm:$0xff]  ;;  %v295_v20 = vld [vmem:[#allocation8 + $0x28] sm:$0xff] }
  0x5c   :  { %584 = vmatprep.subr.bf16.mxu1 %v757_v0  ;;  %v603_v18 = vpack.c.bf16 %v293_v17, %v292_v15  ;;  %v606_v21 = vpack.c.bf16 %v295_v20, %v294_v19  ;;  %v296_v22 = vld [vmem:[#allocation8 + $0x30] sm:$0xff]  ;;  %v297_v23 = vld [vmem:[#allocation8 + $0x38] sm:$0xff]  ;;  %v298_v25 = vld [vmem:[#allocation8 + $0x40] sm:$0xff] }
  0x5d   :  { %562 = vmatpush3.bf16.msra.mxu0 %v561_v41  ;;  %v609_v24 = vpack.c.bf16 %v297_v23, %v296_v22  ;;  %v299_v26 = vld [vmem:[#allocation8 + $0x48] sm:$0xff]  ;;  %v300_v28 = vld [vmem:[#allocation8 + $0x50] sm:$0xff]  ;;  %v301_v29 = vld [vmem:[#allocation8 + $0x58] sm:$0xff] }
  0x5e   :  { %564 = vmatprep.subr.bf16.mxu0 %v563_v42  ;;  %v612_v27 = vpack.c.bf16 %v299_v26, %v298_v25  ;;  %v615_v30 = vpack.c.bf16 %v301_v29, %v300_v28  ;;  %v302_v31 = vld [vmem:[#allocation8 + $0x60] sm:$0xff]  ;;  %v303_v32 = vld [vmem:[#allocation8 + $0x68] sm:$0xff]  ;;  %v401_v35 = vld [vmem:[%s897_s2] ss:$0 sm:$0xff] }
  0x5f   :  { %586 = vmatpush3.bf16.msra.mxu1 %v585_v56  ;;  %v618_v33 = vpack.c.bf16 %v303_v32, %v302_v31  ;;  %v304_v41 = vld [vmem:[#allocation8 + $0x70] sm:$0xff]  ;;  %v305_v42 = vld [vmem:[#allocation8 + $0x78] sm:$0xff] }
  0x60   :  { %587 = vmatprep.subr.bf16.mxu1 %v757_v0  ;;  %v621_v43 = vpack.c.bf16 %v305_v42, %v304_v41  ;;  %v403_v49 = vld [vmem:[%s901_s6] ss:$0 sm:$0xff] }
  0x61   :  { %566 = vmatpush3.bf16.msra.mxu0 %v565_v50 }
  0x62   :  { %568 = vmatprep.subr.bf16.mxu0 %v567_v51 }
  0x63   :  { %589 = vmatpush3.bf16.msra.mxu1 %v588_v63 }
  0x64   :  { %590 = vmatprep.subr.bf16.mxu1 %v757_v0 }
  0x65   :  { %570 = vmatpush3.bf16.msra.mxu0 %v569_v59 }
  0x66   :  { %572 = vmatprep.subr.bf16.mxu0 %v571_v60 }
  0x67   :  { %592 = vmatpush3.bf16.msra.mxu1 %v591_v4 }
  0x68   :  { %593 = vmatprep.subr.bf16.mxu1 %v757_v0 }
  0x69   :  { %574 = vmatpush3.bf16.msra.mxu0 %v573_v3 }
  0x6a   :  { %599 = vmatprep.subr.bf16.mxu0 %v757_v0 }
  0x6b   :  { %595 = vmatpush3.bf16.msra.mxu1 %v594_v8 }
  0x6c   :  { %186 = vmatmul.mubr.f32.vlgmr.msra.gmra.mrb[0].mxu0 %v80_v5  ;;  %596 = vmatprep.subr.bf16.mxu1 %v757_v0 }
  0x6d   :  { %540 = vmatprep.mubr.msk.f32.mxu0 %vm758_vm0, %v759_v12  ;;  %601 = vmatpush3.bf16.msra.mxu0 %v600_v16 }
  0x6e   :  { %602 = vmatprep.subr.bf16.mxu0 %v757_v0 }
  0x6f   :  { %598 = vmatpush3.bf16.msra.mxu1 %v597_v11 }
  0x71   :  { %604 = vmatpush3.bf16.msra.mxu0 %v603_v18 }
  0x72   :  { %605 = vmatprep.subr.bf16.mxu0 %v757_v0 }
  0x75   :  { %607 = vmatpush3.bf16.msra.mxu0 %v606_v21 }
  0x76   :  { %608 = vmatprep.subr.bf16.mxu0 %v757_v0 }
  0x79   :  { %610 = vmatpush3.bf16.msra.mxu0 %v609_v24 }
  0x7a   :  { %611 = vmatprep.subr.bf16.mxu0 %v757_v0 }
  0x7d   :  { %613 = vmatpush3.bf16.msra.mxu0 %v612_v27 }
  0x7e   :  { %614 = vmatprep.subr.bf16.mxu0 %v757_v0 }
  0x81   :  { %616 = vmatpush3.bf16.msra.mxu0 %v615_v30 }
  0x82   :  { %617 = vmatprep.subr.bf16.mxu0 %v757_v0 }
  0x85   :  { %619 = vmatpush3.bf16.msra.mxu0 %v618_v33 }
  0x86   :  { %620 = vmatprep.subr.bf16.mxu0 %v757_v0  ;;  %v402_v0 = vld [vmem:[%s899_s4] ss:$0 sm:$0xff] }
  0x89   :  { %622 = vmatpush3.bf16.msra.mxu0 %v621_v43 }
 0x13f   :  { %v436_v34 = vpop.f32.mrb[0].mxu0 }
 0x140   :  { %v437_v36 = vpop.f32.mrb[1].mxu0 }
 0x141   :  { %v438_v37 = vadd.f32 %v437_v36, %v436_v34 }
 0x143   :  { %v188_v38 = vadd.f32 %v438_v37, %v401_v35 }
 0x145   :  { %vm191_vm1 = vcmp.ge.f32.partialorder %v188_v38, 0.0  ;;  %v192_v39 = vmul.f32 0.01, %v188_v38 }
 0x147   :  { %v193_v40 = vsel %vm191_vm1, %v188_v38, %v192_v39 }
 0x148   :  { %506 = vmatmul.mubr.f32.vlgmr.msra.gmra.mrb[0].mxu1 %v193_v40 }
 0x21b   :  { %v283_v44 = vpop.f32.mrb[0].mxu1 }
 0x21c   :  { %v284_v45 = vadd.f32 %v402_v0, %v283_v44  ;;  %v507_v46 = vpop.f32.mrb[1].mxu1 }
 0x21e   :  { %vm287_vm2 = vcmp.ge.f32.partialorder %v284_v45, 0.0  ;;  %v288_v47 = vmul.f32 0.01, %v284_v45 }
 0x220   :  { %v289_v48 = vsel %vm287_vm2, %v284_v45, %v288_v47 }
 0x221   :  { %541 = vmatmul.mubr.f32.vlgmr.msra.gmra.mrb[2].mxu0 %v289_v48 }
 0x2f4   :  { %v379_v50 = vpop.f32.mrb[2].mxu0 }
 0x2f5   :  { %v380_v51 = vadd.f32 %v403_v49, %v379_v50  ;;  %v542_v52 = vpop.f32.mrb[3].mxu0 }
 0x2f7   :  { %383 = vst [vmem:[#allocation10] sm:$0xff] %v380_v51 }
 0x2f8   :  { %732 = shalt.err (!%p729_p8)
}
 0x2f9   :  { %s733_s9 = scalar_lea.hbm %s902_s7, 128 }
 0x2fa   :  { %p734_p9 = scmp.ne.s32.totalorder %s902_s7, %s733_s9  ;;  %p737_p10 = scmp.lt.u32.totalorder %s733_s9, %s902_s7 }
 0x2fc   :  { %p739_p11 = pnand %p737_p10, %p734_p9 }
 0x2fe   :  { %742 = shalt.err (!%p739_p11)
}
 0x2ff   :  { %393 = dma.vmem_to_hbm [thread:$0]  %s391_s29, 128, %s902_s7, [#allocation4]  }
 0x300   :  { %749 = dma.done.wait [#allocation4], 128  }
 0x301   :  { %750 = vsyncadd [#allocation4], 4294967168 }
 0x302   :  { %397 = vsyncpa [#allocation3], 1 }
 0x303   :  { %398 = vsyncpa [#allocation6], 1 }
 0x304   :  { %399 = vsyncpa [#allocation9], 1 }
 0x305   :  { %400 = vsyncpa [#allocation4], 1 }

</bundles_post_ra>
